<compile_context>
chip_gen: v7x
topology: tpu7x:2x2x1
jax: 0.10.0
libtpu: 0.0.40
codegen_flags: <defaults>
</compile_context>

<pallas_src>
import functools

import jax
import jax.numpy as jnp
from jax.experimental import pallas as pl
from jax.experimental.pallas import tpu as pltpu


def _row_slice_dma_kernel(q_hbm_ref, o_hbm_ref, copy_sem, *, start, n_out):
    """Copy rows [start, start + n_out) of q (HBM) into the output (HBM).

    Pure-DMA kernel: no VMEM staging, no vector loads/stores. `start`/`n_out`
    are static Python ints, so the DMA descriptor is fully static.
    """
    cp = pltpu.make_async_copy(
        q_hbm_ref.at[pl.ds(start, n_out)],  # contiguous row window in HBM
        o_hbm_ref,                          # output buffer in HBM
        copy_sem,
    )
    cp.start()
    cp.wait()


def _pallas_row_slice(query: jax.Array, start: int, n_out: int) -> jax.Array:
    seq, depth = query.shape
    itemsize = jnp.dtype(query.dtype).itemsize
    kernel = functools.partial(_row_slice_dma_kernel, start=start, n_out=n_out)
    return pl.pallas_call(
        kernel,
        out_shape=jax.ShapeDtypeStruct((n_out, depth), query.dtype),
        in_specs=[pl.BlockSpec(memory_space=pl.ANY)],   # raw HBM ref, no auto-DMA
        out_specs=pl.BlockSpec(memory_space=pl.ANY),    # written directly via DMA
        scratch_shapes=[pltpu.SemaphoreType.DMA],
        cost_estimate=pl.CostEstimate(
            flops=0,
            transcendentals=0,
            bytes_accessed=2 * n_out * depth * itemsize,  # read + write
        ),
    )(query)


def add_query_for_treegen_decoder(query: jax.Array,
                                  train: bool,
                                  n_dependent=None,
                                  *,
                                  use_pallas: bool = True) -> jax.Array:
    """AddQueryForTreeGenDecoder.forward on the pre-encoded path tensor
    `query` of shape [seq, max_depth] (int32 stand-in for torch Long)."""
    seq, depth = query.shape

    if train:
        start, n_out = 0, seq - 1
    elif n_dependent:  # matches PyTorch truthiness: n_dependent in (None, 0) -> identity
        n_out = min(int(n_dependent), seq)
        start = seq - n_out
    else:
        # Identity: return the input directly -- no kernel, no copy.
        return query

    if n_out <= 0:
        return query[:0, :]
    if start == 0 and n_out == seq:
        return query  # full-range slice == identity by value

    if not use_pallas:
        # Review item 1: preferred production path -- static slice fused by XLA.
        return query[start:start + n_out, :]

    return _pallas_row_slice(query, start, n_out)


def _reference(query, train, n_dependent=None):
    if train:
        return query[:-1, :]
    elif n_dependent:
        return query[-n_dependent:, :]
    return query


if __name__ == "__main__":
    key = jax.random.PRNGKey(0)

    # Deterministic synthetic "encode_path" output: seq=8 action steps,
    # max_depth=4 path slots, rule ids in [0, 32) with -1 padding in unused
    # depth slots (like the real encoder).
    seq, max_depth = 8, 4
    rule_ids = jax.random.randint(key, (seq, max_depth), 0, 32, dtype=jnp.int32)
    depth_mask = (jnp.arange(max_depth)[None, :] <=
                  (jnp.arange(seq)[:, None] % max_depth)).astype(jnp.int32)
    query = rule_ids * depth_mask + (depth_mask - 1)  # -1 where masked out

    # Case 1: train=True -> query[:-1, :]  (Pallas single-DMA path)
    out_train = jax.block_until_ready(
        add_query_for_treegen_decoder(query, train=True))
    assert out_train.shape == (seq - 1, max_depth)
    assert jnp.array_equal(out_train, _reference(query, True))

    # Case 2: train=False, n_dependent=3 -> query[-3:, :] (unaligned start=5)
    out_dep = jax.block_until_ready(
        add_query_for_treegen_decoder(query, train=False, n_dependent=3))
    assert out_dep.shape == (3, max_depth)
    assert jnp.array_equal(out_dep, _reference(query, False, 3))

    # Case 3: train=False, n_dependent=None -> identity (no kernel launched)
    out_id = jax.block_until_ready(
        add_query_for_treegen_decoder(query, train=False, n_dependent=None))
    assert jnp.array_equal(out_id, query)

    # Case 4: larger, non-tiny sanity check (seq=300, depth=16), both branches.
    big = jax.random.randint(jax.random.PRNGKey(0), (300, 16), 0, 1000,
                             dtype=jnp.int32)
    out_big_dep = jax.block_until_ready(
        add_query_for_treegen_decoder(big, train=False, n_dependent=5))
    assert jnp.array_equal(out_big_dep, _reference(big, False, 5))
    out_big_tr = jax.block_until_ready(
        add_query_for_treegen_decoder(big, train=True))
    assert jnp.array_equal(out_big_tr, _reference(big, True))

    # Non-kernel production path (review item 1) matches the kernel path.
    out_xla = jax.block_until_ready(
        add_query_for_treegen_decoder(query, train=True, use_pallas=False))
    assert jnp.array_equal(out_xla, out_train)

    print("KERNEL_OK")
</pallas_src>

<mosaic_0001>
module attributes {stable_mosaic.version = 11 : i64} {
  func.func @_row_slice_dma_kernel(%arg0: memref<8x4xi32, #tpu.memory_space<any>>, %arg1: memref<7x4xi32, #tpu.memory_space<any>>, %arg2: memref<!tpu.dma_semaphore, #tpu.memory_space<semaphore_mem>>) attributes {dimension_semantics = [], scalar_prefetch = 0 : i64, scratch_operands = 1 : i64, tpu.core_type = #tpu.core_type<tc>} {
    %c0_i32 = arith.constant 0 : i32
    %c0_i32_0 = arith.constant 0 : i32
    %0 = tpu.memref_slice %arg0[%c0_i32, %c0_i32_0] : memref<8x4xi32, #tpu.memory_space<any>> -> memref<7x4xi32, #tpu.memory_space<any>>
    tpu.enqueue_dma source(%0 : memref<7x4xi32, #tpu.memory_space<any>>) target(%arg1 : memref<7x4xi32, #tpu.memory_space<any>>) target_semaphore(%arg2 : memref<!tpu.dma_semaphore, #tpu.memory_space<semaphore_mem>>)
    %c0_i32_1 = arith.constant 0 : i32
    %c0_i32_2 = arith.constant 0 : i32
    %1 = tpu.memref_slice %arg0[%c0_i32_1, %c0_i32_2] : memref<8x4xi32, #tpu.memory_space<any>> -> memref<7x4xi32, #tpu.memory_space<any>>
    tpu.wait_dma2 semaphore(%arg2 : memref<!tpu.dma_semaphore, #tpu.memory_space<semaphore_mem>>) src(%1 : memref<7x4xi32, #tpu.memory_space<any>>) dst(%arg1 : memref<7x4xi32, #tpu.memory_space<any>>)
    return
  }
}

</mosaic_0001>

<bundles_post_ra>
// kernel: tpu_custom_call.1
= control target key start
LH: loop header
LB: loop body
LE: loop exit
PB: predicated region body
PF: predicated region fallthrough
CT: control target
= control target key end

     0   :  { %s88_s0 = inlined_call_operand.vmem [shape: s32[8,4], index: 0, kind: input, shape index: {}]   ;;  %s89_s1 = inlined_call_operand.vmem [shape: s32[7,4], index: 1, kind: output, shape index: {}]  }
   0x1   :  { %v23_v0 = vld [vmem:[%s88_s0] sm:$0x7f] }
   0x2   :  { %24 = vst [vmem:[%s89_s1] sm:$0x7f] %v23_v0 }
   0x3   :  { %49 = vsyncadd [#allocation2], 112 }
   0x4   :  { %70 = dma.done.wait [#allocation2], 112 }
   0x5   :  { %71 = vsyncadd [#allocation2], 4294967184 }
   0x6   :  { %53 = vsyncmov [#allocation2] }
   0x9   :  { %s54_s10 = vpop.sfrf %53 }
   0xa   :  { %p69_p0 = scmp.ne.s32.totalorder %s54_s10, 0 }
   0xc   :  { %58 = shalt.err (%p69_p0)  }

</bundles_post_ra>
